<compile_context>
chip_gen: v6e
topology: v6e:2x2x1
jax: 0.10.0
libtpu: 0.0.40
codegen_flags: <defaults>
</compile_context>

<pallas_src>
import functools

import jax
import jax.numpy as jnp
from jax.experimental import pallas as pl
from jax.experimental.pallas import tpu as pltpu

# Conservative budgets, valid across v5e / v6e (128 MiB VMEM) and v7x (64 MiB).
_RESIDENT_TABLE_MAX_BYTES = 4 * 1024 * 1024   # table small enough to pin in VMEM
_OUT_BLOCK_VMEM_BUDGET = 6 * 1024 * 1024      # double-buffered output block budget
_ISSUE_UNROLL = 8                             # descriptors issued back-to-back
_DRAIN_LAG = 4                                # chunks kept in flight (HBM path)


def _embedding_vmem_gather_kernel(idx_ref, w_ref, o_ref):
    # idx_ref : SMEM (n_total,) int32  -- flattened, pre-clamped token ids
    # w_ref   : VMEM (V, D)            -- full table, resident across grid steps
    # o_ref   : VMEM (block_n, D)      -- gathered rows for this token block
    i = pl.program_id(0)
    block_n = o_ref.shape[0]
    base = i * block_n

    @pl.loop(0, block_n // 8)
    def _gather(c):
        start = c * 8
        # 8 dynamic single-row loads, then one aligned (8, D) store.
        rows = [w_ref[pl.ds(idx_ref[base + start + u], 1), :] for u in range(8)]
        o_ref[pl.ds(pl.multiple_of(start, 8), 8), :] = jnp.concatenate(rows, axis=0)


def _embedding_hbm_gather_kernel(idx_ref, w_hbm, o_ref, sem):
    # idx_ref : SMEM (n_total,) int32  -- flattened, pre-clamped token ids
    # w_hbm   : HBM  (V, D)            -- table, never copied wholesale
    # o_ref   : VMEM (block_n, D)      -- gathered rows for this token block
    # sem     : DMA semaphore shared by all row copies (identical byte counts)
    i = pl.program_id(0)
    block_n = o_ref.shape[0]
    base = i * block_n
    n_chunks = block_n // _ISSUE_UNROLL
    lag = min(_DRAIN_LAG, n_chunks)

    def drain_chunk():
        # Every row copy has the same byte count, so each wait on the shared
        # semaphore retires exactly one of the issued copies.
        for _ in range(_ISSUE_UNROLL):
            pltpu.make_async_copy(w_hbm.at[0], o_ref.at[0], sem).wait()

    @pl.loop(0, n_chunks)
    def _issue(c):
        # Statically unrolled issue: SMEM loads + descriptor pushes co-issue.
        for u in range(_ISSUE_UNROLL):
            j = c * _ISSUE_UNROLL + u
            pltpu.make_async_copy(w_hbm.at[idx_ref[base + j]], o_ref.at[j], sem).start()

        # Overlap drain with issue (lag chunks stay in flight).
        @pl.when(c >= lag)
        def _():
            drain_chunk()

    @pl.loop(0, lag)
    def _tail(_):
        drain_chunk()


def _choose_block_n(n, d, itemsize, requested):
    # Largest block that keeps the double-buffered output slab within budget.
    max_bn = max(8, (_OUT_BLOCK_VMEM_BUDGET // (2 * d * itemsize)) // 8 * 8)
    bn = min(requested, max_bn)
    # No larger than the (8-padded) problem.
    bn = min(bn, max(8, ((n + 7) // 8) * 8))
    bn = max(8, (bn // 8) * 8)
    # Ensure >= 2 blocks when possible so the "parallel" axis shards across
    # both v7x TensorCores (no effect on v5e/v6e).
    if n >= 16 and -(-n // bn) < 2:
        bn = max(8, (((n + 1) // 2 + 7) // 8) * 8)
    return bn


@functools.partial(jax.jit, static_argnames=("block_n", "table_in_vmem"))
def embedding_lookup(indices, weight, block_n=512, table_in_vmem=None):
    """Pallas equivalent of nn.Embedding(vocab, emb_dim)(indices) (forward only)."""
    orig_shape = indices.shape
    v, d = weight.shape
    itemsize = jnp.dtype(weight.dtype).itemsize

    # Hoisted, vectorized clamp (one VPU pass) instead of per-token scalar ops
    # inside the DMA-issue loop.
    # TODO(synk): torch.nn.Embedding raises on out-of-range ids; we clamp.
    flat = jnp.clip(indices.reshape(-1).astype(jnp.int32), 0, v - 1)
    n = flat.shape[0]

    bn = _choose_block_n(n, d, itemsize, block_n)
    n_pad = (-n) % bn
    if n_pad:
        flat = jnp.concatenate([flat, jnp.zeros((n_pad,), jnp.int32)])
    n_total = n + n_pad

    if table_in_vmem is None:
        table_in_vmem = (v * d * itemsize) <= _RESIDENT_TABLE_MAX_BYTES

    if table_in_vmem:
        kernel = _embedding_vmem_gather_kernel
        table_spec = pl.BlockSpec((v, d), lambda i, idx: (0, 0))   # resident in VMEM
        scratch = []
    else:
        kernel = _embedding_hbm_gather_kernel
        table_spec = pl.BlockSpec(memory_space=pl.ANY)             # stays in HBM
        scratch = [pltpu.SemaphoreType.DMA(())]

    out = pl.pallas_call(
        kernel,
        out_shape=jax.ShapeDtypeStruct((n_total, d), weight.dtype),
        grid_spec=pltpu.PrefetchScalarGridSpec(
            num_scalar_prefetch=1,                     # flat token ids -> SMEM
            grid=(n_total // bn,),
            in_specs=[table_spec],
            out_specs=pl.BlockSpec((bn, d), lambda i, idx: (i, 0)),
            scratch_shapes=scratch,
        ),
        compiler_params=pltpu.CompilerParams(
            dimension_semantics=("parallel",),         # shard token blocks on v7x
        ),
    )(flat, weight)

    if n_pad:
        out = out[:n]
    return out.reshape(*orig_shape, d)


def build_embedding_weight(key, vocab_size, emb_dim, initialize_emb, word_to_ix):
    """Mirrors Embedding.__init__: N(0,1) init, then overwrite rows from
    initialize_emb for words present in word_to_ix."""
    weight = jax.random.normal(key, (vocab_size, emb_dim), dtype=jnp.float32)
    if initialize_emb:
        for word, vec in initialize_emb.items():
            if word in word_to_ix:
                ind = word_to_ix[word]
                weight = weight.at[ind].set(jnp.asarray(vec, dtype=jnp.float32))
    return weight


if __name__ == "__main__":
    key = jax.random.PRNGKey(0)
    k_w, k_init, k_idx, k_w2, k_idx2 = jax.random.split(key, 5)

    # --- Small demo matching the module (exercises the VMEM-resident path) ---
    emb_dim, vocab_size = 128, 64
    batch, seq = 2, 8

    word_to_ix = {"<pad>": 0, "hello": 1, "world": 2, "tpu": 3}
    initialize_emb = {
        "hello": jax.random.normal(k_init, (emb_dim,), dtype=jnp.float32),
        "world": jnp.arange(emb_dim, dtype=jnp.float32) / emb_dim,
        "not_in_vocab": jnp.ones((emb_dim,), dtype=jnp.float32),  # skipped
    }
    weight = build_embedding_weight(
        k_w, vocab_size, emb_dim, initialize_emb, word_to_ix
    )
    indices = jax.random.randint(k_idx, (batch, seq), 0, vocab_size, dtype=jnp.int32)

    out = jax.block_until_ready(embedding_lookup(indices, weight))
    ref = weight[indices]
    assert out.shape == (batch, seq, emb_dim)
    assert out.dtype == jnp.float32
    assert bool(jnp.array_equal(out, ref))

    # --- Larger check forcing the HBM-gather path (big-vocab regime) ---
    v2, d2 = 512, 128
    weight2 = jax.random.normal(k_w2, (v2, d2), dtype=jnp.float32)
    indices2 = jax.random.randint(k_idx2, (4, 96), 0, v2, dtype=jnp.int32)
    out2 = jax.block_until_ready(
        embedding_lookup(indices2, weight2, table_in_vmem=False)
    )
    assert bool(jnp.array_equal(out2, weight2[indices2]))

    print("KERNEL_OK")
</pallas_src>

<mosaic_0001>
module attributes {stable_mosaic.version = 11 : i64} {
  func.func @_embedding_vmem_gather_kernel(%arg0: i32, %arg1: memref<16xi32, #tpu.memory_space<smem>>, %arg2: memref<64x128xf32, #tpu.memory_space<vmem>>, %arg3: memref<8x128xf32, #tpu.memory_space<vmem>>) attributes {dimension_semantics = [#tpu.dimension_semantics<parallel>], iteration_bounds = array<i64: 2>, scalar_prefetch = 1 : i64, scratch_operands = 0 : i64, tpu.core_type = #tpu.core_type<tc>, window_params = [{pipeline_mode = #tpu.pipeline_mode<synchronous>, transform_indices = @transform_0, window_bounds = array<i64: 64, 128>}, {transform_indices = @transform_1, window_bounds = array<i64: 8, 128>}]} {
    %c8_i32 = arith.constant 8 : i32
    %0 = arith.muli %arg0, %c8_i32 : i32
    %c0_i32 = arith.constant 0 : i32
    %c1_i32 = arith.constant 1 : i32
    %1 = arith.muli %c0_i32, %c1_i32 : i32
    %c0_i32_0 = arith.constant 0 : i32
    %2 = arith.addi %c0_i32_0, %1 : i32
    %c8_i32_1 = arith.constant 8 : i32
    %3 = arith.muli %2, %c8_i32_1 : i32
    %4 = arith.addi %0, %3 : i32
    %c0_i32_2 = arith.constant 0 : i32
    %5 = arith.addi %4, %c0_i32_2 : i32
    %6 = arith.index_cast %5 : i32 to index
    %7 = memref.load %arg1[%6] : memref<16xi32, #tpu.memory_space<smem>>
    %8 = arith.index_cast %7 : i32 to index
    %c0 = arith.constant 0 : index
    %9 = vector.load %arg2[%8, %c0] : memref<64x128xf32, #tpu.memory_space<vmem>>, vector<1x128xf32>
    %10 = arith.addi %0, %3 : i32
    %c1_i32_3 = arith.constant 1 : i32
    %11 = arith.addi %10, %c1_i32_3 : i32
    %12 = arith.index_cast %11 : i32 to index
    %13 = memref.load %arg1[%12] : memref<16xi32, #tpu.memory_space<smem>>
    %14 = arith.index_cast %13 : i32 to index
    %c0_4 = arith.constant 0 : index
    %15 = vector.load %arg2[%14, %c0_4] : memref<64x128xf32, #tpu.memory_space<vmem>>, vector<1x128xf32>
    %16 = arith.addi %0, %3 : i32
    %c2_i32 = arith.constant 2 : i32
    %17 = arith.addi %16, %c2_i32 : i32
    %18 = arith.index_cast %17 : i32 to index
    %19 = memref.load %arg1[%18] : memref<16xi32, #tpu.memory_space<smem>>
    %20 = arith.index_cast %19 : i32 to index
    %c0_5 = arith.constant 0 : index
    %21 = vector.load %arg2[%20, %c0_5] : memref<64x128xf32, #tpu.memory_space<vmem>>, vector<1x128xf32>
    %22 = arith.addi %0, %3 : i32
    %c3_i32 = arith.constant 3 : i32
    %23 = arith.addi %22, %c3_i32 : i32
    %24 = arith.index_cast %23 : i32 to index
    %25 = memref.load %arg1[%24] : memref<16xi32, #tpu.memory_space<smem>>
    %26 = arith.index_cast %25 : i32 to index
    %c0_6 = arith.constant 0 : index
    %27 = vector.load %arg2[%26, %c0_6] : memref<64x128xf32, #tpu.memory_space<vmem>>, vector<1x128xf32>
    %28 = arith.addi %0, %3 : i32
    %c4_i32 = arith.constant 4 : i32
    %29 = arith.addi %28, %c4_i32 : i32
    %30 = arith.index_cast %29 : i32 to index
    %31 = memref.load %arg1[%30] : memref<16xi32, #tpu.memory_space<smem>>
    %32 = arith.index_cast %31 : i32 to index
    %c0_7 = arith.constant 0 : index
    %33 = vector.load %arg2[%32, %c0_7] : memref<64x128xf32, #tpu.memory_space<vmem>>, vector<1x128xf32>
    %34 = arith.addi %0, %3 : i32
    %c5_i32 = arith.constant 5 : i32
    %35 = arith.addi %34, %c5_i32 : i32
    %36 = arith.index_cast %35 : i32 to index
    %37 = memref.load %arg1[%36] : memref<16xi32, #tpu.memory_space<smem>>
    %38 = arith.index_cast %37 : i32 to index
    %c0_8 = arith.constant 0 : index
    %39 = vector.load %arg2[%38, %c0_8] : memref<64x128xf32, #tpu.memory_space<vmem>>, vector<1x128xf32>
    %40 = arith.addi %0, %3 : i32
    %c6_i32 = arith.constant 6 : i32
    %41 = arith.addi %40, %c6_i32 : i32
    %42 = arith.index_cast %41 : i32 to index
    %43 = memref.load %arg1[%42] : memref<16xi32, #tpu.memory_space<smem>>
    %44 = arith.index_cast %43 : i32 to index
    %c0_9 = arith.constant 0 : index
    %45 = vector.load %arg2[%44, %c0_9] : memref<64x128xf32, #tpu.memory_space<vmem>>, vector<1x128xf32>
    %46 = arith.addi %0, %3 : i32
    %c7_i32 = arith.constant 7 : i32
    %47 = arith.addi %46, %c7_i32 : i32
    %48 = arith.index_cast %47 : i32 to index
    %49 = memref.load %arg1[%48] : memref<16xi32, #tpu.memory_space<smem>>
    %50 = arith.index_cast %49 : i32 to index
    %c0_10 = arith.constant 0 : index
    %51 = vector.load %arg2[%50, %c0_10] : memref<64x128xf32, #tpu.memory_space<vmem>>, vector<1x128xf32>
    %52 = tpu.concatenate %9, %15, %21, %27, %33, %39, %45, %51 in 0 : vector<1x128xf32>, vector<1x128xf32>, vector<1x128xf32>, vector<1x128xf32>, vector<1x128xf32>, vector<1x128xf32>, vector<1x128xf32>, vector<1x128xf32> -> vector<8x128xf32>
    %53 = tpu.assume_multiple %3, 8 : i32
    %54 = arith.index_cast %53 : i32 to index
    %c0_11 = arith.constant 0 : index
    %55 = vector.load %arg3[%54, %c0_11] : memref<8x128xf32, #tpu.memory_space<vmem>>, vector<8x128xf32>
    tpu.vector_store %arg3[%54, %c0_11], %52 {strides = array<i32>} : memref<8x128xf32, #tpu.memory_space<vmem>>, vector<8x128xf32>,
    %c1_i32_12 = arith.constant 1 : i32
    return
  }
  func.func @transform_0(%arg0: i32, %arg1: memref<16xi32, #tpu.memory_space<smem>>) -> (i32, i32) {
    %c0_i32 = arith.constant 0 : i32
    %c0_i32_0 = arith.constant 0 : i32
    %c0_i32_1 = arith.constant 0 : i32
    return %c0_i32, %c0_i32_0 : i32, i32
  }
  func.func @transform_1(%arg0: i32, %arg1: memref<16xi32, #tpu.memory_space<smem>>) -> (i32, i32) {
    %c0_i32 = arith.constant 0 : i32
    %c0_i32_0 = arith.constant 0 : i32
    return %arg0, %c0_i32 : i32, i32
  }
}

</mosaic_0001>

<bundles_post_ra>
// kernel: embedding_lookup.1
= control target key start
LH: loop header
LB: loop body
LE: loop exit
PB: predicated region body
PF: predicated region fallthrough
CT: control target
= control target key end

     0   :  { %s580_s0 = inlined_call_operand.vmem [shape: s32[16], index: 0, kind: input, shape index: {}]   ;;  %s581_s1 = inlined_call_operand.hbm [shape: f32[64,128], index: 1, kind: input, shape index: {}]   ;;  %s582_s2 = inlined_call_operand.hbm [shape: f32[16,128], index: 2, kind: output, shape index: {}]  }
   0x1   :  { %s7_s11 = sshll.u32 %s580_s0, 4  ;;  %s8_s11 = int_to_ptr.vmem [resolvable:$true] %s7_s11 }
   0x2   :  { %s330_s12 = scalar_lea.vmem %s8_s11, 16  ;;  %p335_p1 = scmp.lt.s32.totalorder %s8_s11, %s8_s11 }
   0x3   :  { %p331_p0 = scmp.ne.s32.totalorder %s8_s11, %s330_s12  ;;  %p336_p2 = scmp.lt.s32.totalorder %s330_s12, %s330_s12 }
   0x5   :  { %p337_p3 = por %p336_p2, %p335_p1 }
   0x7   :  { %p338_p4 = pnand %p337_p3, %p331_p0 }
   0x9   :  { %341 = shalt.err (!%p338_p4)  }
   0xa   :  { %s436_s13 = smov [#allocation3]  }
   0xb   :  { %10 = dma.vmem_to_smem %s8_s11, 16, %s436_s13, [#allocation2] }
   0xc   :  { %410 = dma.done.wait [#allocation2], 16 }
   0xd   :  { %411 = vsyncadd [#allocation2], 4294967280 }
   0xe   :  { %12 = sfence }
   0xf   :  { %13 = vsyncpa [#allocation5], 0 }
  0x10   :  { %14 = vsyncpa [#allocation6], 0 }
  0x11   :  { %16 = vsyncpa [#allocation6 + $0x1], 0  ;;  %s459_s14 = smov 0   ;;  %s461_s15 = smov 0  }
  0x12   :  { %s463_s0 = smov 0   ;;  %s465_s16 = smov 0  }
  0x13 LB: > { %s480_s17 = sadd.s32 4294967295, %s434_s16   ;;  %s266_s18 = sadd.s32 4294967294, %s434_s16   ;;  %s434_s16 = sphi %s465_s16, %s590_s16   ;;  %s430_s0 = sphi %s463_s0, %s589_s0   ;;  %s426_s15 = sphi %s461_s15, %s588_s15   ;;  %s422_s14 = sphi %s459_s14, %s587_s14  }
  0x14   : > { %s484_s19 = sadd.s32 1, %s434_s16   ;;  %s50_s20 = sadd.s32 1, %s430_s0 }
  0x15   : > { %s47_s21 = ssub.s32 %s434_s16, %s484_s19  ;;  %p60_p5 = scmp.ne.s32.totalorder %s430_s0, %s426_s15 }
  0x16   : > { %p48_p6 = scmp.eq.s32.totalorder %s47_s21, 0  ;;  %p61_p7 = scmp.eq.s32.totalorder %s480_s17, 1 }
  0x17   : > { %p66_p8 = scmp.ne.s32.totalorder %s426_s15, %s422_s14  ;;  %p67_p9 = scmp.eq.s32.totalorder %s266_s18, 1 }
  0x18   : > { %s495_s22 = scalar_select %p48_p6, %s430_s0, %s50_s20  }
  0x19   : > { %p497_p10 = por %p61_p7, %p60_p5  ;;  %p501_p11 = por %p67_p9, %p66_p8 }
  0x1a   : > { %p267_p12 = scmp.ge.s32.totalorder %s434_s16, 1  ;;  %p74_p13 = scmp.lt.s32.totalorder %s434_s16, 3 }
  0x1b   : > { %s584_s24 = scalar_select %p501_p11, 1, 0 }
  0x1c   : > { %p291_p0 = scmp.eq.s32.totalorder %s480_s17, 0  ;;  %p508_p1 = pnand %p267_p12, %p74_p13 }
  0x1d   : > { %s437_s26 = smov [#allocation4]  }
  0x1e   : > { %s86_s27 = sshll.u32 %s437_s26, 4  ;;  %p283_p2 = pneg %p508_p1  ;;  %s87_s27 = int_to_ptr.vmem [resolvable:$true] %s86_s27 }
  0x1f   : > { %s353_s28 = scalar_lea.vmem %s87_s27, 1024  ;;  %p361_p8 = scmp.lt.s32.totalorder %s87_s27, %s87_s27 }
  0x20   : > { %p284_p3 = pnand %p291_p0, %p283_p2  ;;  %p354_p5 = scmp.ne.s32.totalorder %s87_s27, %s353_s28 }
  0x21   : > { %p362_p9 = scmp.lt.s32.totalorder %s353_s28, %s353_s28 }
  0x22   : > { %p344_p4 = pneg %p284_p3 }
  0x23   : > { %p363_p11 = por %p362_p9, %p361_p8 }
  0x24   : > { %p356_p6 = pnand %p354_p5, %p344_p4 }
  0x26   : > { %p357_p7 = pneg %p356_p6 }
  0x28   : > { %p364_p12 = pnand %p363_p11, %p357_p7 }
  0x2a   : > { %367 = shalt.err (!%p364_p12)
}
  0x2b   : > { %s438_s29 = smov 128   ;;  %s439_s30 = smov 8  }
  0x2c   : > { %286 = dma.hbm_to_vmem [thread:$0]  (!%p284_p3), %s581_s1, 1024, %s87_s27, [#allocation5], %s438_s29, %s438_s29, %s439_s30  }
  0x2d   : > { %102 = sbr.rel (%p508_p1) target bundleno = 88 (0x58), region = 24 }
  0x32   : > { %413 = dma.done.wait (%p291_p0), [#allocation5], 1024  }
  0x33   : > { %415 = vsyncadd (%p291_p0), [#allocation5], 4294966272  ;;  %s114_s5 = sand.u32 1, %s426_s15   ;;  %s272_s6 = sshll.u32 %s480_s17, 3  ;;  %vm170_vm0 = vcmask 1040384   ;;  %vm172_vm1 = vcmask 1041408  }
  0x34   : > { %s118_s7 = sld [smem:[#allocation3 + %s272_s6]]  ;;  %s529_s8 = sshll.u32 %s114_s5, 3  ;;  %vm174_vm2 = vcmask 1042432   ;;  %vm176_vm3 = vcmask 1043456   ;;  %vm178_vm4 = vcmask 1044480   ;;  %vm180_vm5 = vcmask 1045504  }
  0x35   : > { %s121_s9 = sadd.s32 1, %s272_s6  ;;  %s125_s11 = sadd.s32 2, %s272_s6  ;;  %vm182_vm6 = vcmask 1046528  }
  0x36   : > { %s122_s10 = sld [smem:[#allocation3 + %s121_s9]]  ;;  %s129_s13 = sadd.s32 3, %s272_s6 }
  0x37   : > { %s126_s12 = sld [smem:[#allocation3 + %s125_s11]]  ;;  %s133_s20 = sadd.s32 4, %s272_s6 }
  0x38   : > { %s130_s18 = sld [smem:[#allocation3 + %s129_s13]]  ;;  %s137_s25 = sadd.s32 5, %s272_s6 }
  0x39   : > { %s134_s21 = sld [smem:[#allocation3 + %s133_s20]]  ;;  %s141_s27 = sadd.s32 6, %s272_s6 }
  0x3a   : > { %s138_s26 = sld [smem:[#allocation3 + %s137_s25]]  ;;  %s145_s28 = sadd.s32 7, %s272_s6 }
  0x3b   : > { %s531_s29 = sld [smem:[#allocation3 + %s141_s27]]  ;;  %s119_s30 = scalar_lea.vmem [#allocation4], %s118_s7 }
  0x3c   : > { %v120_v0 = vld [vmem:[%s119_s30] sm:$0x1]  ;;  %s123_s3 = scalar_lea.vmem [#allocation4], %s122_s10  ;;  %s533_s4 = sld [smem:[#allocation3 + %s145_s28]] }
  0x3d   : > { %v124_v1 = vld [vmem:[%s123_s3] sm:$0x1]  ;;  %s127_s9 = scalar_lea.vmem [#allocation4], %s126_s12  ;;  %s116_s10 = scalar_lea.vmem [#allocation7], %s529_s8 }
  0x3e   : > { %v128_v2 = vld [vmem:[%s127_s9] sm:$0x1]  ;;  %v150_v3 = vrot.slane %v124_v1, 7  ;;  %s131_s11 = scalar_lea.vmem [#allocation4], %s130_s18  ;;  %s199_s12 = sshll.u32 %s116_s10, 4  ;;  %s540_s12 = int_to_ptr.vmem [resolvable:$true] %s199_s12 }
  0x3f   : > { %v132_v4 = vld [vmem:[%s131_s11] sm:$0x1]  ;;  %v153_v5 = vrot.slane %v128_v2, 6  ;;  %s135_s6 = scalar_lea.vmem [#allocation4], %s134_s21  ;;  %s274_s18 = sshll.u32 %s480_s17, 7 }
  0x40   : > { %v136_v6 = vld [vmem:[%s135_s6] sm:$0x1]  ;;  %v156_v7 = vrot.slane %v132_v4, 5  ;;  %v171_v8 = vsel %vm170_vm0, %v120_v0, %v150_v3  ;;  %s139_s7 = scalar_lea.vmem [#allocation4], %s138_s26  ;;  %s197_s8 = scalar_lea.hbm %s582_s2, %s274_s18 }
  0x41   : > { %v140_v9 = vld [vmem:[%s139_s7] sm:$0x1]  ;;  %v159_v10 = vrot.slane %v136_v6, 4  ;;  %v173_v11 = vsel %vm172_vm1, %v171_v8, %v153_v5  ;;  %s143_s13 = scalar_lea.vmem [#allocation4], %s531_s29  ;;  %s186_s17 = scalar_lea.sflag [#allocation6], %s114_s5 }
  0x42   : > { %v162_v12 = vrot.slane %v140_v9, 3  ;;  %v175_v13 = vsel %vm174_vm2, %v173_v11, %v156_v7  ;;  %v144_v14 = vld [vmem:[%s143_s13] sm:$0x1]  ;;  %s147_s20 = scalar_lea.vmem [#allocation4], %s533_s4  ;;  %s368_s26 = scalar_lea.vmem %s540_s12, 128 }
  0x43   : > { %v177_v15 = vsel %vm176_vm3, %v175_v13, %v159_v10  ;;  %v148_v16 = vld [vmem:[%s147_s20] sm:$0x1]  ;;  %v165_v17 = vrot.slane %v144_v14, 2  ;;  %p369_p11 = scmp.ne.s32.totalorder %s540_s12, %s368_s26  ;;  %s440_s27 = smov [#allocation7]  }
  0x44   : > { %v179_v18 = vsel %vm178_vm4, %v177_v15, %v162_v12  ;;  %v168_v19 = vrot.slane %v148_v16, 1  ;;  %s372_s28 = sshll.u32 %s440_s27, 4  ;;  %s373_s28 = int_to_ptr.vmem [resolvable:$false] %s372_s28 }
  0x45   : > { %v181_v20 = vsel %vm180_vm5, %v179_v18, %v165_v17  ;;  %p370_p13 = pnand %p369_p11, %p497_p10  ;;  %s374_s29 = scalar_lea.vmem %s373_s28, 256 }
  0x46   : > { %v183_v21 = vsel %vm182_vm6, %v181_v20, %v168_v19  ;;  %p375_p1 = scmp.lt.s32.totalorder %s540_s12, %s373_s28  ;;  %p376_p2 = scmp.lt.s32.totalorder %s374_s29, %s368_s26 }
  0x47   : > { %184 = vst [vmem:[%s116_s10] sm:$0xff] %v183_v21  ;;  %p371_p0 = pneg %p370_p13 }
  0x48   : > { %p377_p3 = por %p376_p2, %p375_p1 }
  0x4a   : > { %p378_p4 = pnand %p377_p3, %p371_p0 }
  0x4c   : > { %381 = shalt.err (!%p378_p4)
}
  0x4d   : > { %s382_s30 = scalar_lea.hbm %s197_s8, 128  ;;  %s386_s4 = scalar_lea.hbm %s582_s2, 256 }
  0x4e   : > { %p383_p5 = scmp.ne.s32.totalorder %s197_s8, %s382_s30  ;;  %p387_p8 = scmp.lt.s32.totalorder %s197_s8, %s582_s2 }
  0x4f   : > { %p388_p9 = scmp.lt.s32.totalorder %s386_s4, %s382_s30 }
  0x50   : > { %p384_p6 = pnand %p383_p5, %p497_p10 }
  0x51   : > { %p389_p12 = por %p388_p9, %p387_p8 }
  0x52   : > { %p385_p7 = pneg %p384_p6 }
  0x54   : > { %p390_p11 = pnand %p389_p12, %p385_p7 }
  0x56   : > { %393 = shalt.err (!%p390_p11)
}
  0x57   : > { %281 = dma.vmem_to_hbm [thread:$0]  (%p497_p10), %s540_s12, 128, %s197_s8, %s186_s17  }
  0x58 PF: > { %p293_p13 = scmp.ge.s32.totalorder %s434_s16, 2  ;;  %s211_s6 = sand.u32 1, %s422_s14  }
  0x59   : > { %p586_p0 = scmp.ne.s32.totalorder %s584_s24, 0  ;;  %s212_s7 = scalar_lea.sflag [#allocation6], %s211_s6 }
  0x5b   : > { %p288_p1 = pnand %p293_p13, %p586_p0 }
  0x5d   : > { %p289_p2 = pneg %p288_p1 }
  0x5f   : > { %417 = dma.done.wait (%p289_p2), %s212_s7, 128  }
  0x60   : > { %419 = vsyncadd (%p289_p2), %s212_s7, 4294967168  ;;  %p19_p3 = scmp.ge.s32.totalorder %s484_s19, 4   ;;  %s587_s14 = smov %s426_s15 }
  0x61   : > { %s588_s15 = smov %s430_s0  ;;  %s589_s0 = smov %s495_s22 }
  0x62   : > { %s590_s16 = smov %s484_s19  ;;  %21 = sbr.rel (!%p19_p3) target bundleno = 19 (0x13), region = 69 }
  0x67   :  { %217 = vsyncpa [#allocation5], 1 }
  0x68   :  { %219 = vsyncpa [#allocation5 + $0x1], 1 }
  0x69   :  { %220 = vsyncpa [#allocation6], 1 }
  0x6a   :  { %222 = vsyncpa [#allocation6 + $0x1], 1 }

</bundles_post_ra>
